<compile_context>
chip_gen: v7x
topology: tpu7x:2x2x1
jax: 0.10.0
libtpu: 0.0.40
codegen_flags: <defaults>
</compile_context>

<pallas_src>
from functools import partial

import jax
import jax.numpy as jnp
from jax.experimental import pallas as pl
from jax.experimental.pallas import tpu as pltpu


def _vmem_limit_bytes():
    # Adaptive VMEM budget: ~2/3 of physical capacity (≈85 MiB on 128-MiB
    # v5e/v6e, ≈42 MiB on 64-MiB v7x), leaving headroom for compiler scratch.
    try:
        cap = pltpu.get_tpu_info().vmem_capacity_bytes
    except Exception:
        cap = 64 * 1024 * 1024
    return int(cap) * 2 // 3


# ----------------------------------------------------------------------------
# Kernel 1: node-feature projection + fused attention-vector projection.
# Gridded over node-row tiles (no whole-array residency -> no VMEM scaling
# cliff); the block-diagonal att matrix gives a_src & a_dst for all heads in
# one MXU matmul.
# ----------------------------------------------------------------------------
def gat_project_kernel(x_ref, w_ref, att_ref, xw_ref, a_ref):
    xw = jnp.dot(x_ref[...], w_ref[...], preferred_element_type=jnp.float32)
    # a_all[:, :H] = per-node a_src, a_all[:, H:] = per-node a_dst.
    a_ref[...] = jnp.dot(xw, att_ref[...], preferred_element_type=jnp.float32)
    xw_ref[...] = xw.astype(xw_ref.dtype)


# ----------------------------------------------------------------------------
# Kernel 2: attention softmax + aggregation + ELU + Linear, per dst-node tile.
# ----------------------------------------------------------------------------
def gat_attn_kernel(a_dst_ref, adj_ref, a_src_ref, xw_ref, bconv_ref,
                    wlin_ref, blin_ref, out_ref, *, heads, ch):
    # Hoist only the boolean compare (int8 -> mask); no f32 [T, Np] bias temp.
    adj_pos = adj_ref[...] > 0                                     # [T, Np] bool

    # Accumulate head contributions directly into the final Linear output.
    out_acc = jnp.zeros(out_ref.shape, jnp.float32) + blin_ref[...]  # [T, Cout]

    # TODO(synk): switch to lax.fori_loop(..., unroll=True) if heads ever
    # grows beyond ~4 (bounds live ranges of the [T, Np] score temps).
    # TODO(synk): for very large Np on v7x, add an inner source-axis chunk
    # loop (online softmax over pl.ds columns) so score temps are [T, chunk].
    for h in range(heads):                                         # static, small
        a_src = a_src_ref[h:h + 1, :]                              # [1, Np]
        a_dst = a_dst_ref[:, h:h + 1]                              # [T, 1]
        e = a_dst + a_src                                          # [T, Np]
        e = jnp.where(e > 0, e, 0.2 * e)                           # leaky_relu(0.2)
        e = jnp.where(adj_pos, e, -1e30)                           # mask non-edges
        m = jnp.max(e, axis=-1, keepdims=True)
        p = jnp.exp(e - m)                                         # unnormalized
        rs = jnp.sum(p, axis=-1, keepdims=True)

        # alpha @ xh in bf16 with f32 accumulation; softmax denominator folded
        # into the (much smaller) per-head output via approx reciprocal (EUP).
        xh = xw_ref[:, h * ch:(h + 1) * ch]                        # [Np, C] bf16
        oh = jnp.dot(p.astype(jnp.bfloat16), xh,
                     preferred_element_type=jnp.float32)           # [T, C] f32
        oh = oh * pl.reciprocal(rs, approx=True)

        fh = oh + bconv_ref[:, h * ch:(h + 1) * ch]                # conv bias slice
        # Safe ELU: never exp() large positives.
        fh = jnp.where(fh > 0, fh, jnp.exp(jnp.minimum(fh, 0.0)) - 1.0)

        out_acc = out_acc + jnp.dot(fh, wlin_ref[h * ch:(h + 1) * ch, :],
                                    preferred_element_type=jnp.float32)

    # C_out=4 lane width -> masked stores, but the epilogue is tiny and
    # amortized over the 128-row tile (pad to 128 only if it ever shows up
    # on the critical path).
    out_ref[...] = out_acc.astype(out_ref.dtype)


# ----------------------------------------------------------------------------
# Wrapper.
# ----------------------------------------------------------------------------
def gat_forward(x, adj, params, *, tile=128):
    """x: [N, F_in] node features, adj: [N, N] dense adjacency (self-loops included)."""
    assert tile % 32 == 0, "tile must be a multiple of 32 (int8 adj sublanes)"
    N, F_in = x.shape
    H, C = params["att_src"].shape
    HC = H * C
    C_out = params["w_lin"].shape[1]
    vmem_limit = _vmem_limit_bytes()

    # Pad N up to a multiple of the dst tile.
    Np = ((N + tile - 1) // tile) * tile
    if Np != N:
        x = jnp.pad(x, ((0, Np - N), (0, 0)))
        adj = jnp.pad(adj, ((0, Np - N), (0, Np - N)))
    adj_i8 = adj.astype(jnp.int8)        # 4x smaller HBM stream than f32

    # Block-diagonal attention-vector matrix: one matmul gives a_src & a_dst
    # for all heads.
    att_blk = jnp.zeros((HC, 2 * H), jnp.float32)
    for h in range(H):
        att_blk = att_blk.at[h * C:(h + 1) * C, h].set(params["att_src"][h])
        att_blk = att_blk.at[h * C:(h + 1) * C, H + h].set(params["att_dst"][h])

    grid = (Np // tile,)

    xw, a_all = pl.pallas_call(
        gat_project_kernel,
        out_shape=(jax.ShapeDtypeStruct((Np, HC), jnp.bfloat16),
                   jax.ShapeDtypeStruct((Np, 2 * H), jnp.float32)),
        grid=grid,
        in_specs=[
            pl.BlockSpec((tile, F_in), lambda i: (i, 0)),      # x rows (tiled)
            pl.BlockSpec((F_in, HC), lambda i: (0, 0)),        # W (resident)
            pl.BlockSpec((HC, 2 * H), lambda i: (0, 0)),       # att block-diag
        ],
        out_specs=(
            pl.BlockSpec((tile, HC), lambda i: (i, 0)),        # xw bf16
            pl.BlockSpec((tile, 2 * H), lambda i: (i, 0)),     # a_all
        ),
        compiler_params=pltpu.CompilerParams(
            dimension_semantics=("parallel",),
            vmem_limit_bytes=vmem_limit,
        ),
    )(x, params["w"], att_blk)

    # Layout plumbing (tiny, done once outside the kernels).
    a_src_T = a_all[:, :H].T                                   # [H, Np] (row per head)
    a_dst = a_all[:, H:]                                       # [Np, H] (tiled by dst)

    # TODO(synk): if DMA on the adj stream is still exposed on v5e after the
    # larger tile, add pipeline_mode=pl.Buffered(3) on the adj BlockSpec, or
    # move to a CSR/edge-list formulation for genuinely sparse graphs.
    out = pl.pallas_call(
        partial(gat_attn_kernel, heads=H, ch=C),
        out_shape=jax.ShapeDtypeStruct((Np, C_out), jnp.float32),
        grid=grid,
        in_specs=[
            pl.BlockSpec((tile, H), lambda i: (i, 0)),         # a_dst   (tiled)
            pl.BlockSpec((tile, Np), lambda i: (i, 0)),        # adj i8  (tiled, pipelined)
            pl.BlockSpec((H, Np), lambda i: (0, 0)),           # a_src_T (resident)
            pl.BlockSpec((Np, HC), lambda i: (0, 0)),          # xw bf16 (resident, 2-D)
            pl.BlockSpec((1, HC), lambda i: (0, 0)),           # b_conv
            pl.BlockSpec((HC, C_out), lambda i: (0, 0)),       # w_lin
            pl.BlockSpec((1, C_out), lambda i: (0, 0)),        # b_lin
        ],
        out_specs=pl.BlockSpec((tile, C_out), lambda i: (i, 0)),
        compiler_params=pltpu.CompilerParams(
            dimension_semantics=("parallel",),                 # megacore sharding
            vmem_limit_bytes=vmem_limit,
        ),
    )(a_dst, adj_i8, a_src_T, xw, params["b_conv"], params["w_lin"],
      params["b_lin"])
    return out[:N]


# ----------------------------------------------------------------------------
# Pure-JAX reference (PyG GATConv -> ELU -> Linear semantics).
# ----------------------------------------------------------------------------
def gat_reference(x, adj, params):
    H, C = params["att_src"].shape
    xw = x @ params["w"]
    outs = []
    for h in range(H):
        xh = xw[:, h * C:(h + 1) * C]
        a_s = xh @ params["att_src"][h]
        a_d = xh @ params["att_dst"][h]
        e = a_d[:, None] + a_s[None, :]
        e = jnp.where(e > 0, e, 0.2 * e)
        e = jnp.where(adj > 0, e, -jnp.inf)
        alpha = jax.nn.softmax(e, axis=-1)
        outs.append(alpha @ xh)
    feat = jnp.concatenate(outs, axis=-1) + params["b_conv"]
    feat = jax.nn.elu(feat)
    return feat @ params["w_lin"] + params["b_lin"]


if __name__ == "__main__":
    key = jax.random.PRNGKey(0)
    N, F_in, C_hidden, HEADS, C_out, E = 64, 8, 8, 2, 4, 256
    ks = jax.random.split(key, 10)

    # Inputs of the PyTorch forward: x, edge_index, edge_weight.
    x = jax.random.normal(ks[0], (N, F_in), jnp.float32)
    src = jax.random.randint(ks[1], (E,), 0, N)
    dst = jax.random.randint(ks[2], (E,), 0, N)
    edge_index = jnp.stack([src, dst])                        # [2, E]
    edge_weight = jax.random.uniform(ks[3], (E,), jnp.float32)
    # TODO(synk): edge_weight is unused — GATConv was built with edge_dim=None,
    # so edge attributes never enter the attention computation.

    # Glue: dense adjacency mask with self-loops (add_self_loops=True),
    # adj[i, j] = 1 iff there is an edge j -> i.
    adj = jnp.zeros((N, N), jnp.float32).at[dst, src].set(1.0)
    adj = jnp.maximum(adj, jnp.eye(N, dtype=jnp.float32))

    # Deterministic synthetic parameters (shapes follow GATConv / nn.Linear).
    params = {
        "w":       0.1 * jax.random.normal(ks[4], (F_in, HEADS * C_hidden), jnp.float32),
        "att_src": 0.1 * jax.random.normal(ks[5], (HEADS, C_hidden), jnp.float32),
        "att_dst": 0.1 * jax.random.normal(ks[6], (HEADS, C_hidden), jnp.float32),
        "b_conv":  jnp.zeros((1, HEADS * C_hidden), jnp.float32),
        "w_lin":   0.1 * jax.random.normal(ks[7], (HEADS * C_hidden, C_out), jnp.float32),
        "b_lin":   0.01 * jnp.ones((1, C_out), jnp.float32),
    }

    out = gat_forward(x, adj, params)
    jax.block_until_ready(out)
    assert out.shape == (N, C_out) and out.dtype == jnp.float32
    assert bool(jnp.all(jnp.isfinite(out)))

    ref = gat_reference(x, adj, params)
    err = float(jnp.max(jnp.abs(out - ref)))
    assert err < 5e-2, f"max abs error {err}"
    print("KERNEL_OK")
</pallas_src>

<mosaic_0001>
module attributes {stable_mosaic.version = 11 : i64} {
  func.func @gat_project_kernel(%arg0: i32, %arg1: memref<128x8xf32, #tpu.memory_space<vmem>>, %arg2: memref<8x16xf32, #tpu.memory_space<vmem>>, %arg3: memref<16x4xf32, #tpu.memory_space<vmem>>, %arg4: memref<128x16xbf16, #tpu.memory_space<vmem>>, %arg5: memref<128x4xf32, #tpu.memory_space<vmem>>) attributes {dimension_semantics = [#tpu.dimension_semantics<parallel>], iteration_bounds = array<i64: 1>, scalar_prefetch = 0 : i64, scratch_operands = 0 : i64, tpu.core_type = #tpu.core_type<tc>, window_params = [{transform_indices = @transform_0, window_bounds = array<i64: 128, 8>}, {pipeline_mode = #tpu.pipeline_mode<synchronous>, transform_indices = @transform_1, window_bounds = array<i64: 8, 16>}, {pipeline_mode = #tpu.pipeline_mode<synchronous>, transform_indices = @transform_2, window_bounds = array<i64: 16, 4>}, {transform_indices = @transform_3, window_bounds = array<i64: 128, 16>}, {transform_indices = @transform_4, window_bounds = array<i64: 128, 4>}]} {
    %c0 = arith.constant 0 : index
    %c0_0 = arith.constant 0 : index
    %0 = vector.load %arg1[%c0, %c0_0] : memref<128x8xf32, #tpu.memory_space<vmem>>, vector<128x8xf32>
    %c0_1 = arith.constant 0 : index
    %c0_2 = arith.constant 0 : index
    %1 = vector.load %arg2[%c0_1, %c0_2] : memref<8x16xf32, #tpu.memory_space<vmem>>, vector<8x16xf32>
    %cst = arith.constant dense<0.000000e+00> : vector<128x16xf32>
    %2 = tpu.matmul %0, %1, %cst {dimension_numbers = #tpu.dot_dimension_numbers<[1], [0], [0], [1], [0, 0, 1, 1], [], []>} : vector<128x8xf32>, vector<8x16xf32>, vector<128x16xf32> -> vector<128x16xf32>
    %c0_3 = arith.constant 0 : index
    %c0_4 = arith.constant 0 : index
    %3 = vector.load %arg3[%c0_3, %c0_4] : memref<16x4xf32, #tpu.memory_space<vmem>>, vector<16x4xf32>
    %cst_5 = arith.constant dense<0.000000e+00> : vector<128x4xf32>
    %4 = tpu.matmul %2, %3, %cst_5 {dimension_numbers = #tpu.dot_dimension_numbers<[1], [0], [0], [1], [0, 0, 1, 1], [], []>} : vector<128x16xf32>, vector<16x4xf32>, vector<128x4xf32> -> vector<128x4xf32>
    %c0_6 = arith.constant 0 : index
    %c0_7 = arith.constant 0 : index
    %5 = vector.load %arg5[%c0_6, %c0_7] : memref<128x4xf32, #tpu.memory_space<vmem>>, vector<128x4xf32>
    tpu.vector_store %arg5[%c0_6, %c0_7], %4 {strides = array<i32>} : memref<128x4xf32, #tpu.memory_space<vmem>>, vector<128x4xf32>,
    %6 = arith.truncf %2 : vector<128x16xf32> to vector<128x16xbf16>
    %c0_8 = arith.constant 0 : index
    %c0_9 = arith.constant 0 : index
    %7 = vector.load %arg4[%c0_8, %c0_9] : memref<128x16xbf16, #tpu.memory_space<vmem>>, vector<128x16xbf16>
    tpu.vector_store %arg4[%c0_8, %c0_9], %6 {strides = array<i32>} : memref<128x16xbf16, #tpu.memory_space<vmem>>, vector<128x16xbf16>,
    return
  }
  func.func @transform_0(%arg0: i32) -> (i32, i32) {
    %c0_i32 = arith.constant 0 : i32
    %c0_i32_0 = arith.constant 0 : i32
    return %arg0, %c0_i32 : i32, i32
  }
  func.func @transform_1(%arg0: i32) -> (i32, i32) {
    %c0_i32 = arith.constant 0 : i32
    %c0_i32_0 = arith.constant 0 : i32
    %c0_i32_1 = arith.constant 0 : i32
    return %c0_i32, %c0_i32_0 : i32, i32
  }
  func.func @transform_2(%arg0: i32) -> (i32, i32) {
    %c0_i32 = arith.constant 0 : i32
    %c0_i32_0 = arith.constant 0 : i32
    %c0_i32_1 = arith.constant 0 : i32
    return %c0_i32, %c0_i32_0 : i32, i32
  }
  func.func @transform_3(%arg0: i32) -> (i32, i32) {
    %c0_i32 = arith.constant 0 : i32
    %c0_i32_0 = arith.constant 0 : i32
    return %arg0, %c0_i32 : i32, i32
  }
  func.func @transform_4(%arg0: i32) -> (i32, i32) {
    %c0_i32 = arith.constant 0 : i32
    %c0_i32_0 = arith.constant 0 : i32
    return %arg0, %c0_i32 : i32, i32
  }
}

</mosaic_0001>

<bundles_post_ra>
// kernel: tpu_custom_call.1
= control target key start
LH: loop header
LB: loop body
LE: loop exit
PB: predicated region body
PF: predicated region fallthrough
CT: control target
= control target key end

     0   :  { %vm33_vm0 = vcmask 64512   ;;  %vm229_vm1 = vcmask 130048   ;;  %vm504_vm2 = vcmask 125952   ;;  %vm423_vm3 = vcmask 31744   ;;  %s928_s1 = inlined_call_operand.vmem [shape: f32[8,16], index: 1, kind: input, shape index: {}]   ;;  %s929_s0 = inlined_call_operand.vmem [shape: f32[128,8], index: 0, kind: input, shape index: {}]   ;;  %s930_s2 = inlined_call_operand.vmem [shape: f32[16,4], index: 2, kind: input, shape index: {}]   ;;  %s931_s3 = inlined_call_operand.vmem [shape: bf16[128,16], index: 3, kind: output, shape index: {0}]   ;;  %s932_s4 = inlined_call_operand.vmem [shape: f32[128,4], index: 4, kind: output, shape index: {1}]  }
   0x1   :  { %v32_v0 = vld [vmem:[%s928_s1] sm:$0xff]  ;;  %v17_v2 = vld [vmem:[%s929_s0 + $0x8] sm:$0xff]  ;;  %v18_v3 = vld [vmem:[%s929_s0 + $0x10] sm:$0xff] }
   0x2   :  { %v16_v1 = vld [vmem:[%s929_s0] sm:$0xff]  ;;  %628 = vmatprep.subr.mxu0 %v32_v0  ;;  %v19_v4 = vld [vmem:[%s929_s0 + $0x18] sm:$0xff]  ;;  %v228_v7 = vld [vmem:[%s930_s2 + $0x8] sm:$0xff] }
   0x3   :  { %630 = vmatprep.mubr.msk.f32.mxu0 %vm33_vm0, %v16_v1  ;;  %629 = vmatpush3.msra.mxu0 %v32_v0  ;;  %v20_v5 = vld [vmem:[%s929_s0 + $0x20] sm:$0xff]  ;;  %v21_v9 = vld [vmem:[%s929_s0 + $0x28] sm:$0xff]  ;;  %v22_v10 = vld [vmem:[%s929_s0 + $0x30] sm:$0xff] }
   0x4   :  { %631 = vmatmul.mubr.msk.f32.vlgmr.msra.gmra.mrb[0].mxu0 %vm33_vm0, %v17_v2  ;;  %v227_v6 = vld [vmem:[%s930_s2] sm:$0xff]  ;;  %v23_v11 = vld [vmem:[%s929_s0 + $0x38] sm:$0xff]  ;;  %v25_v13 = vld [vmem:[%s929_s0 + $0x48] sm:$0xff] }
   0x5   :  { %633 = vmatprep.mubr.msk.f32.mxu0 %vm33_vm0, %v18_v3  ;;  %v682_v8 = vpack.c.bf16 %v228_v7, %v227_v6  ;;  %v24_v12 = vld [vmem:[%s929_s0 + $0x40] sm:$0xff]  ;;  %v26_v14 = vld [vmem:[%s929_s0 + $0x50] sm:$0xff]  ;;  %v27_v15 = vld [vmem:[%s929_s0 + $0x58] sm:$0xff] }
   0x6   :  { %v28_v16 = vld [vmem:[%s929_s0 + $0x60] sm:$0xff]  ;;  %v29_v17 = vld [vmem:[%s929_s0 + $0x68] sm:$0xff]  ;;  %v30_v18 = vld [vmem:[%s929_s0 + $0x70] sm:$0xff] }
   0x7   :  { %683 = vmatprep.subr.bf16.mxu1 %v682_v8  ;;  %v31_v19 = vld [vmem:[%s929_s0 + $0x78] sm:$0xff] }
   0x8   :  { %634 = vmatmul.mubr.msk.f32.gmra.mrb[2].mxu0 %vm33_vm0, %v19_v4  ;;  %685 = vmatpush3.bf16.msra.mxu1 %v682_v8 }
   0x9   :  { %636 = vmatprep.mubr.msk.f32.mxu0 %vm33_vm0, %v20_v5 }
   0xc   :  { %637 = vmatmul.mubr.msk.f32.gmra.mrb[4].mxu0 %vm33_vm0, %v21_v9 }
   0xd   :  { %639 = vmatprep.mubr.msk.f32.mxu0 %vm33_vm0, %v22_v10 }
  0x10   :  { %640 = vmatmul.mubr.msk.f32.gmra.mrb[6].mxu0 %vm33_vm0, %v23_v11 }
  0x11   :  { %642 = vmatprep.mubr.msk.f32.mxu0 %vm33_vm0, %v24_v12 }
  0x14   :  { %643 = vmatmul.mubr.msk.f32.gmra.mrb[8].mxu0 %vm33_vm0, %v25_v13 }
  0x15   :  { %645 = vmatprep.mubr.msk.f32.mxu0 %vm33_vm0, %v26_v14 }
  0x18   :  { %646 = vmatmul.mubr.msk.f32.gmra.mrb[10].mxu0 %vm33_vm0, %v27_v15 }
  0x19   :  { %648 = vmatprep.mubr.msk.f32.mxu0 %vm33_vm0, %v28_v16 }
  0x1c   :  { %649 = vmatmul.mubr.msk.f32.gmra.mrb[12].mxu0 %vm33_vm0, %v29_v17 }
  0x1d   :  { %651 = vmatprep.mubr.msk.f32.mxu0 %vm33_vm0, %v30_v18 }
  0x20   :  { %652 = vmatmul.mubr.msk.f32.gmra.mrb[14].mxu0 %vm33_vm0, %v31_v19 }
  0xd7   :  { %v632_v20 = vpop.f32.mrb[0].mxu0 }
  0xd8   :  { %v578_v21 = vpack.c.bf16 %v632_v20, %v632_v20  ;;  %v148_v22 = vpop.f32.mrb[1].mxu0 }
  0xd9   :  { %v577_v23 = vpack.c.bf16 %v148_v22, %v148_v22  ;;  %658 = vmatprep.mubr.msk.f32.mxu1 %vm229_vm1, %v148_v22 }
  0xda   :  { %506 = vst.msk [vmem:[%s931_s3 + $0x4] sm:$0xf] %vm504_vm2, %v578_v21  ;;  %659 = vmatmul.mubr.msk.f32.vlgmr.msra.gmra.mrb[0].mxu1 %vm229_vm1, %v632_v20 }
  0xdb   :  { %505 = vst.msk [vmem:[%s931_s3] sm:$0xf] %vm504_vm2, %v577_v23  ;;  %v635_v24 = vpop.f32.mrb[2].mxu0 }
  0xdc   :  { %v580_v25 = vpack.c.bf16 %v635_v24, %v635_v24  ;;  %v158_v26 = vpop.f32.mrb[3].mxu0 }
  0xdd   :  { %v579_v27 = vpack.c.bf16 %v158_v26, %v158_v26  ;;  %661 = vmatprep.mubr.msk.f32.mxu1 %vm229_vm1, %v158_v26 }
  0xde   :  { %508 = vst.msk [vmem:[%s931_s3 + $0xc] sm:$0xf] %vm504_vm2, %v580_v25  ;;  %662 = vmatmul.mubr.msk.f32.gmra.mrb[2].mxu1 %vm229_vm1, %v635_v24 }
  0xdf   :  { %507 = vst.msk [vmem:[%s931_s3 + $0x8] sm:$0xf] %vm504_vm2, %v579_v27  ;;  %v638_v28 = vpop.f32.mrb[4].mxu0 }
  0xe0   :  { %v582_v29 = vpack.c.bf16 %v638_v28, %v638_v28  ;;  %v168_v30 = vpop.f32.mrb[5].mxu0 }
  0xe1   :  { %v581_v31 = vpack.c.bf16 %v168_v30, %v168_v30  ;;  %664 = vmatprep.mubr.msk.f32.mxu1 %vm229_vm1, %v168_v30 }
  0xe2   :  { %510 = vst.msk [vmem:[%s931_s3 + $0x14] sm:$0xf] %vm504_vm2, %v582_v29  ;;  %665 = vmatmul.mubr.msk.f32.gmra.mrb[4].mxu1 %vm229_vm1, %v638_v28 }
  0xe3   :  { %509 = vst.msk [vmem:[%s931_s3 + $0x10] sm:$0xf] %vm504_vm2, %v581_v31  ;;  %v641_v32 = vpop.f32.mrb[6].mxu0 }
  0xe4   :  { %v584_v33 = vpack.c.bf16 %v641_v32, %v641_v32  ;;  %v178_v34 = vpop.f32.mrb[7].mxu0 }
  0xe5   :  { %v583_v35 = vpack.c.bf16 %v178_v34, %v178_v34  ;;  %667 = vmatprep.mubr.msk.f32.mxu1 %vm229_vm1, %v178_v34 }
  0xe6   :  { %512 = vst.msk [vmem:[%s931_s3 + $0x1c] sm:$0xf] %vm504_vm2, %v584_v33  ;;  %668 = vmatmul.mubr.msk.f32.gmra.mrb[6].mxu1 %vm229_vm1, %v641_v32 }
  0xe7   :  { %511 = vst.msk [vmem:[%s931_s3 + $0x18] sm:$0xf] %vm504_vm2, %v583_v35  ;;  %v644_v36 = vpop.f32.mrb[8].mxu0 }
  0xe8   :  { %v586_v37 = vpack.c.bf16 %v644_v36, %v644_v36  ;;  %v188_v38 = vpop.f32.mrb[9].mxu0 }
  0xe9   :  { %v585_v39 = vpack.c.bf16 %v188_v38, %v188_v38  ;;  %670 = vmatprep.mubr.msk.f32.mxu1 %vm229_vm1, %v188_v38 }
  0xea   :  { %514 = vst.msk [vmem:[%s931_s3 + $0x24] sm:$0xf] %vm504_vm2, %v586_v37  ;;  %671 = vmatmul.mubr.msk.f32.gmra.mrb[8].mxu1 %vm229_vm1, %v644_v36 }
  0xeb   :  { %513 = vst.msk [vmem:[%s931_s3 + $0x20] sm:$0xf] %vm504_vm2, %v585_v39  ;;  %v647_v40 = vpop.f32.mrb[10].mxu0 }
  0xec   :  { %v588_v41 = vpack.c.bf16 %v647_v40, %v647_v40  ;;  %v198_v42 = vpop.f32.mrb[11].mxu0 }
  0xed   :  { %v587_v43 = vpack.c.bf16 %v198_v42, %v198_v42  ;;  %673 = vmatprep.mubr.msk.f32.mxu1 %vm229_vm1, %v198_v42 }
  0xee   :  { %516 = vst.msk [vmem:[%s931_s3 + $0x2c] sm:$0xf] %vm504_vm2, %v588_v41  ;;  %674 = vmatmul.mubr.msk.f32.gmra.mrb[10].mxu1 %vm229_vm1, %v647_v40 }
  0xef   :  { %515 = vst.msk [vmem:[%s931_s3 + $0x28] sm:$0xf] %vm504_vm2, %v587_v43  ;;  %v650_v44 = vpop.f32.mrb[12].mxu0 }
  0xf0   :  { %v590_v45 = vpack.c.bf16 %v650_v44, %v650_v44  ;;  %v208_v46 = vpop.f32.mrb[13].mxu0 }
  0xf1   :  { %v589_v47 = vpack.c.bf16 %v208_v46, %v208_v46  ;;  %676 = vmatprep.mubr.msk.f32.mxu1 %vm229_vm1, %v208_v46 }
  0xf2   :  { %518 = vst.msk [vmem:[%s931_s3 + $0x34] sm:$0xf] %vm504_vm2, %v590_v45  ;;  %677 = vmatmul.mubr.msk.f32.gmra.mrb[12].mxu1 %vm229_vm1, %v650_v44 }
  0xf3   :  { %517 = vst.msk [vmem:[%s931_s3 + $0x30] sm:$0xf] %vm504_vm2, %v589_v47  ;;  %v653_v48 = vpop.f32.mrb[14].mxu0 }
  0xf4   :  { %v592_v49 = vpack.c.bf16 %v653_v48, %v653_v48  ;;  %v218_v50 = vpop.f32.mrb[15].mxu0 }
  0xf5   :  { %v591_v51 = vpack.c.bf16 %v218_v50, %v218_v50  ;;  %679 = vmatprep.mubr.msk.f32.mxu1 %vm229_vm1, %v218_v50 }
  0xf6   :  { %520 = vst.msk [vmem:[%s931_s3 + $0x3c] sm:$0xf] %vm504_vm2, %v592_v49  ;;  %680 = vmatmul.mubr.msk.f32.gmra.mrb[14].mxu1 %vm229_vm1, %v653_v48 }
  0xf7   :  { %519 = vst.msk [vmem:[%s931_s3 + $0x38] sm:$0xf] %vm504_vm2, %v591_v51 }
 0x1ad   :  { %v660_v52 = vpop.f32.mrb[0].mxu1 }
 0x1ae   :  { %425 = vst.msk [vmem:[%s932_s4 + $0x8] sm:$0xff] %vm423_vm3, %v660_v52  ;;  %v344_v53 = vpop.f32.mrb[1].mxu1 }
 0x1af   :  { %424 = vst.msk [vmem:[%s932_s4] sm:$0xff] %vm423_vm3, %v344_v53 }
 0x1b1   :  { %v663_v54 = vpop.f32.mrb[2].mxu1 }
 0x1b2   :  { %427 = vst.msk [vmem:[%s932_s4 + $0x18] sm:$0xff] %vm423_vm3, %v663_v54  ;;  %v354_v55 = vpop.f32.mrb[3].mxu1 }
 0x1b3   :  { %426 = vst.msk [vmem:[%s932_s4 + $0x10] sm:$0xff] %vm423_vm3, %v354_v55 }
 0x1b5   :  { %v666_v56 = vpop.f32.mrb[4].mxu1 }
 0x1b6   :  { %429 = vst.msk [vmem:[%s932_s4 + $0x28] sm:$0xff] %vm423_vm3, %v666_v56  ;;  %v364_v57 = vpop.f32.mrb[5].mxu1 }
 0x1b7   :  { %428 = vst.msk [vmem:[%s932_s4 + $0x20] sm:$0xff] %vm423_vm3, %v364_v57 }
 0x1b9   :  { %v669_v58 = vpop.f32.mrb[6].mxu1 }
 0x1ba   :  { %431 = vst.msk [vmem:[%s932_s4 + $0x38] sm:$0xff] %vm423_vm3, %v669_v58  ;;  %v374_v59 = vpop.f32.mrb[7].mxu1 }
 0x1bb   :  { %430 = vst.msk [vmem:[%s932_s4 + $0x30] sm:$0xff] %vm423_vm3, %v374_v59 }
 0x1bd   :  { %v672_v60 = vpop.f32.mrb[8].mxu1 }
 0x1be   :  { %433 = vst.msk [vmem:[%s932_s4 + $0x48] sm:$0xff] %vm423_vm3, %v672_v60  ;;  %v384_v61 = vpop.f32.mrb[9].mxu1 }
 0x1bf   :  { %432 = vst.msk [vmem:[%s932_s4 + $0x40] sm:$0xff] %vm423_vm3, %v384_v61 }
 0x1c1   :  { %v675_v62 = vpop.f32.mrb[10].mxu1 }
 0x1c2   :  { %435 = vst.msk [vmem:[%s932_s4 + $0x58] sm:$0xff] %vm423_vm3, %v675_v62  ;;  %v394_v63 = vpop.f32.mrb[11].mxu1 }
 0x1c3   :  { %434 = vst.msk [vmem:[%s932_s4 + $0x50] sm:$0xff] %vm423_vm3, %v394_v63 }
 0x1c5   :  { %v678_v0 = vpop.f32.mrb[12].mxu1 }
 0x1c6   :  { %437 = vst.msk [vmem:[%s932_s4 + $0x68] sm:$0xff] %vm423_vm3, %v678_v0  ;;  %v404_v1 = vpop.f32.mrb[13].mxu1 }
 0x1c7   :  { %436 = vst.msk [vmem:[%s932_s4 + $0x60] sm:$0xff] %vm423_vm3, %v404_v1 }
 0x1c9   :  { %v681_v2 = vpop.f32.mrb[14].mxu1 }
 0x1ca   :  { %439 = vst.msk [vmem:[%s932_s4 + $0x78] sm:$0xff] %vm423_vm3, %v681_v2  ;;  %v414_v3 = vpop.f32.mrb[15].mxu1 }
 0x1cb   :  { %438 = vst.msk [vmem:[%s932_s4 + $0x70] sm:$0xff] %vm423_vm3, %v414_v3 }

</bundles_post_ra>
